<compile_context>
chip_gen: v6e
topology: v6e:2x2x1
jax: 0.10.0
libtpu: 0.0.40
codegen_flags: <defaults>
</compile_context>

<pallas_src>
import numpy as np
import jax
import jax.numpy as jnp
from jax.experimental import pallas as pl
from jax.experimental.pallas import tpu as pltpu


def _round_up(x: int, m: int) -> int:
    return (x + m - 1) // m * m


def _round_down(x: int, m: int) -> int:
    return (x // m) * m


def _cdiv(a: int, b: int) -> int:
    return (a + b - 1) // b


def _make_unigram_kernel(T: int, t_tile: int, tiles_per_split: int, needs_mask: bool):
    def kernel(x_ref, s_ref, o_ref, counts_ref):
        # x_ref: (V, t_tile) native-layout token tile; s_ref: (V, 1);
        # o_ref: (1, 1, 1) per-split partial; counts_ref: (V, 1) f32 scratch.
        c = pl.program_id(0)                 # token-stream split ("parallel"; megacore on v7x)
        t = pl.program_id(1)                 # token tile within split ("arbitrary" reduction)

        @pl.when(t == 0)
        def _init():
            counts_ref[...] = jnp.zeros_like(counts_ref)

        xv = x_ref[...].astype(jnp.float32)  # upcast keeps bf16/int8 one-hot counts exact
        if needs_mask:
            # Zero out lanes past the end of the token stream (ragged last tile
            # and any fully-overhanging tile of the second split).
            start = (c * tiles_per_split + t) * t_tile
            lane = jax.lax.broadcasted_iota(jnp.int32, xv.shape, 1)
            xv = jnp.where(lane < (T - start), xv, 0.0)

        counts_ref[...] += jnp.sum(xv, axis=1, keepdims=True)   # (V, 1) partial counts

        @pl.when(t == pl.num_programs(1) - 1)
        def _finalize():
            sv = s_ref[...].astype(jnp.float32)                  # (V, 1)
            sig = jax.nn.sigmoid(sv)
            log_z = jnp.log(jnp.sum(sig))                        # normalizer over V
            # Stable log(sigmoid(s)) = min(s, 0) - log(1 + exp(-|s|)): finite for
            # very negative logits, so zero-count rows never produce 0 * (-inf).
            log_sig = jnp.minimum(sv, 0.0) - jnp.log(1.0 + jnp.exp(-jnp.abs(sv)))
            log_p = log_sig - log_z                              # (V, 1)
            o_ref[...] = jnp.sum(counts_ref[...] * log_p).reshape(1, 1, 1)

    return kernel


def unigram_forward(x: jax.Array, s: jax.Array, *, max_t_tile=None, n_split: int = 2) -> jax.Array:
    """x: (V, T) one-hot/count matrix (f32 / bf16 / int8), s: (V, 1) f32 -> (1, 1) f32."""
    V, T = x.shape
    assert s.shape == (V, 1)

    itemsize = jnp.dtype(x.dtype).itemsize
    sublane_pack = 8 * max(1, 4 // itemsize)          # 8 (f32), 16 (bf16), 32 (int8)
    v_rows = _round_up(V, sublane_pack)               # physical sublane footprint of one tile

    # Per-generation VMEM budget (v7x: 64 MiB -> 48 MiB scoped; v5e/v6e: 128 -> 96 MiB).
    try:
        vmem_cap = int(pltpu.get_tpu_info().vmem_capacity_bytes)
    except Exception:
        vmem_cap = 64 * 1024 * 1024                   # conservative fallback (v7x per-core)
    vmem_limit = (3 * vmem_cap) // 4

    # Double-buffered x tiles + tiny s / counts / out buffers + internal slack
    # must all fit under the scoped limit (accounts for the x2 double buffering).
    fixed = 2 * 1024 * 1024 + 8 * v_rows * 4
    per_buf = max(0, (vmem_limit - fixed) // 2)
    t_tile = _round_down(per_buf // (v_rows * itemsize), 128)
    t_tile = max(128, min(t_tile, _round_up(T, 128)))
    if max_t_tile is not None:
        t_tile = max(128, min(t_tile, _round_down(int(max_t_tile), 128)))
    # TODO(synk): for very wide vocabularies (v_rows * itemsize * 256 > vmem budget)
    # add a V-blocking grid axis; not needed at homework-scale vocab sizes.

    n_tiles = _cdiv(T, t_tile)
    n_split_eff = max(1, min(n_split, n_tiles))       # 2-way token split (both v7x TCs)
    tiles_per_split = _cdiv(n_tiles, n_split_eff)
    covered = n_split_eff * tiles_per_split * t_tile
    needs_mask = covered != T

    if n_split_eff * tiles_per_split == n_tiles:
        x_index_map = lambda c, t: (0, c * tiles_per_split + t)
    else:
        last = n_tiles - 1                            # clamp overhanging tiles (fully masked in-kernel)
        x_index_map = lambda c, t: (0, jnp.minimum(c * tiles_per_split + t, last))

    kernel = _make_unigram_kernel(T, t_tile, tiles_per_split, needs_mask)

    cost = pl.CostEstimate(
        flops=int(2 * V * T + 16 * V),
        transcendentals=int(4 * V),
        bytes_accessed=int(V * T * itemsize + V * 4 + n_split_eff * 4),
    )

    # TODO(synk): if the caller holds raw token ids, a scalar-prefetch/gather
    # formulation skips the dense one-hot entirely (V x fewer HBM bytes).
    # TODO(synk): if a v7x trace still shows DMA gaps between steps, add
    # pipeline_mode=pl.Buffered(3) on the x BlockSpec (re-derive the budget first).
    partials = pl.pallas_call(
        kernel,
        out_shape=jax.ShapeDtypeStruct((n_split_eff, 1, 1), jnp.float32),
        grid_spec=pltpu.PrefetchScalarGridSpec(
            num_scalar_prefetch=0,
            grid=(n_split_eff, tiles_per_split),
            in_specs=[
                pl.BlockSpec((V, t_tile), x_index_map),          # x tile, native layout, pipelined
                pl.BlockSpec((V, 1), lambda c, t: (0, 0)),       # s resident every step
            ],
            out_specs=pl.BlockSpec((1, 1, 1), lambda c, t: (c, 0, 0)),   # per-split partial
            scratch_shapes=[pltpu.VMEM((V, 1), jnp.float32)],    # running counts
        ),
        compiler_params=pltpu.CompilerParams(
            dimension_semantics=("parallel", "arbitrary"),
            vmem_limit_bytes=int(vmem_limit),
        ),
        cost_estimate=cost,
    )(x, s.astype(jnp.float32))

    return jnp.sum(partials, axis=0).reshape(1, 1)


def init_unigram_params(V: int) -> jax.Array:
    """Deterministic init matching nn.Parameter(logit(ones((V,1))/V))."""
    p0 = np.ones((V, 1), dtype=np.float64) / V
    s0 = np.log(p0) - np.log(1.0 - p0)     # logit
    return jnp.asarray(s0.astype(np.float32))


if __name__ == "__main__":
    def reference(x, s):
        sig = jax.nn.sigmoid(s)
        p = sig / jnp.sum(sig)
        return jnp.sum(x, axis=1, keepdims=True).T @ jnp.log(p)

    key = jax.random.PRNGKey(0)
    k1, k2 = jax.random.split(key)

    # --- main case: small vocab, one large lane-dense tile (no masking path) ---
    V, T = 32, 1024
    s = init_unigram_params(V)
    tokens = jax.random.randint(k1, (T,), 0, V)
    x = jax.nn.one_hot(tokens, V, dtype=jnp.float32).T          # (V, T), PyTorch layout

    out = jax.block_until_ready(unigram_forward(x, s))
    assert out.shape == (1, 1)
    np.testing.assert_allclose(np.asarray(out), np.asarray(reference(x, s)),
                               rtol=1e-5, atol=1e-4)

    # --- bf16 input path (half the HBM bytes; counts stay exact via f32 accumulation) ---
    out_bf16 = jax.block_until_ready(unigram_forward(x.astype(jnp.bfloat16), s))
    np.testing.assert_allclose(np.asarray(out_bf16), np.asarray(reference(x, s)),
                               rtol=1e-5, atol=1e-4)

    # --- multi-tile + 2-way split + ragged-tail masking path (forced tiny tiles) ---
    V2, T2 = 48, 600
    s2 = init_unigram_params(V2)
    tokens2 = jax.random.randint(k2, (T2,), 0, V2)
    x2 = jax.nn.one_hot(tokens2, V2, dtype=jnp.float32).T
    out2 = jax.block_until_ready(unigram_forward(x2, s2, max_t_tile=128))
    np.testing.assert_allclose(np.asarray(out2), np.asarray(reference(x2, s2)),
                               rtol=1e-5, atol=1e-4)

    print("KERNEL_OK")
</pallas_src>

<mosaic_0001>
module attributes {stable_mosaic.version = 11 : i64} {
  func.func @kernel(%arg0: i32, %arg1: i32, %arg2: memref<32x1024xf32, #tpu.memory_space<vmem>>, %arg3: memref<32x1xf32, #tpu.memory_space<vmem>>, %arg4: memref<1x1x1xf32, #tpu.memory_space<vmem>>, %arg5: memref<32x1xf32, #tpu.memory_space<vmem>>) attributes {dimension_semantics = [#tpu.dimension_semantics<parallel>, #tpu.dimension_semantics<arbitrary>], iteration_bounds = array<i64: 1, 1>, scalar_prefetch = 0 : i64, scratch_operands = 1 : i64, tpu.core_type = #tpu.core_type<tc>, window_params = [{transform_indices = @transform_0, window_bounds = array<i64: 32, 1024>}, {pipeline_mode = #tpu.pipeline_mode<synchronous>, transform_indices = @transform_1, window_bounds = array<i64: 32, 1>}, {transform_indices = @transform_2, window_bounds = array<i64: 1, 1, 1>}]} {
    %c0_i32 = arith.constant 0 : i32
    %0 = arith.cmpi eq, %arg1, %c0_i32 : i32
    %1 = arith.extui %0 : i1 to i32
    %c0_i32_0 = arith.constant 0 : i32
    %2 = arith.cmpi ne, %1, %c0_i32_0 : i32
    scf.if %2 {
      %cst_8 = arith.constant 0.000000e+00 : f32
      %12 = vector.broadcast %cst_8 : f32 to vector<32x1xf32>
      %c0_9 = arith.constant 0 : index
      %c0_10 = arith.constant 0 : index
      %13 = vector.load %arg5[%c0_9, %c0_10] : memref<32x1xf32, #tpu.memory_space<vmem>>, vector<32x1xf32>
      tpu.vector_store %arg5[%c0_9, %c0_10], %12 {strides = array<i32>} : memref<32x1xf32, #tpu.memory_space<vmem>>, vector<32x1xf32>,
    } else {
    }
    %c0 = arith.constant 0 : index
    %c0_1 = arith.constant 0 : index
    %3 = vector.load %arg2[%c0, %c0_1] : memref<32x1024xf32, #tpu.memory_space<vmem>>, vector<32x1024xf32>
    %c0_2 = arith.constant 0 : index
    %c0_3 = arith.constant 0 : index
    %4 = vector.load %arg5[%c0_2, %c0_3] : memref<32x1xf32, #tpu.memory_space<vmem>>, vector<32x1xf32>
    %cst = arith.constant dense<0.000000e+00> : vector<32xf32>
    %5 = vector.multi_reduction <add>, %3, %cst [1] : vector<32x1024xf32> to vector<32xf32>
    %6 = vector.shape_cast %5 : vector<32xf32> to vector<32x1xf32>
    %7 = arith.addf %4, %6 : vector<32x1xf32>
    %c0_4 = arith.constant 0 : index
    %c0_5 = arith.constant 0 : index
    %8 = vector.load %arg5[%c0_4, %c0_5] : memref<32x1xf32, #tpu.memory_space<vmem>>, vector<32x1xf32>
    tpu.vector_store %arg5[%c0_4, %c0_5], %7 {strides = array<i32>} : memref<32x1xf32, #tpu.memory_space<vmem>>, vector<32x1xf32>,
    %c0_i32_6 = arith.constant 0 : i32
    %9 = arith.cmpi eq, %arg1, %c0_i32_6 : i32
    %10 = arith.extui %9 : i1 to i32
    %c0_i32_7 = arith.constant 0 : i32
    %11 = arith.cmpi ne, %10, %c0_i32_7 : i32
    scf.if %11 {
      %c0_8 = arith.constant 0 : index
      %c0_9 = arith.constant 0 : index
      %12 = vector.load %arg3[%c0_8, %c0_9] : memref<32x1xf32, #tpu.memory_space<vmem>>, vector<32x1xf32>
      %13 = arith.negf %12 : vector<32x1xf32>
      %14 = math.exp %13 : vector<32x1xf32>
      %cst_10 = arith.constant 1.000000e+00 : f32
      %15 = vector.broadcast %cst_10 : f32 to vector<32x1xf32>
      %16 = arith.addf %15, %14 : vector<32x1xf32>
      %17 = arith.divf %15, %16 : vector<32x1xf32>
      %18 = vector.shape_cast %17 : vector<32x1xf32> to vector<1x32x1xf32>
      %cst_11 = arith.constant dense<0.000000e+00> : vector<1xf32>
      %19 = vector.multi_reduction <add>, %18, %cst_11 [1, 2] : vector<1x32x1xf32> to vector<1xf32>
      %20 = vector.shape_cast %19 : vector<1xf32> to vector<1x1x1xf32>
      %21 = vector.extract %20[0, 0, 0] : f32 from vector<1x1x1xf32>
      %22 = math.log %21 : f32
      %cst_12 = arith.constant 0.000000e+00 : f32
      %23 = vector.broadcast %cst_12 : f32 to vector<32x1xf32>
      %24 = arith.minimumf %12, %23 : vector<32x1xf32>
      %25 = math.absf %12 : vector<32x1xf32>
      %cst_13 = arith.constant 0.000000e+00 : f32
      %26 = vector.broadcast %cst_13 : f32 to vector<32x1xf32>
      %27 = arith.subf %26, %25 : vector<32x1xf32>
      %28 = math.exp %27 : vector<32x1xf32>
      %cst_14 = arith.constant 1.000000e+00 : f32
      %29 = vector.broadcast %cst_14 : f32 to vector<32x1xf32>
      %30 = arith.addf %29, %28 : vector<32x1xf32>
      %31 = math.log %30 : vector<32x1xf32>
      %32 = arith.subf %24, %31 : vector<32x1xf32>
      %33 = vector.broadcast %22 : f32 to vector<32x1xf32>
      %34 = arith.subf %32, %33 : vector<32x1xf32>
      %c0_15 = arith.constant 0 : index
      %c0_16 = arith.constant 0 : index
      %35 = vector.load %arg5[%c0_15, %c0_16] : memref<32x1xf32, #tpu.memory_space<vmem>>, vector<32x1xf32>
      %36 = arith.mulf %35, %34 : vector<32x1xf32>
      %37 = vector.shape_cast %36 : vector<32x1xf32> to vector<1x32x1xf32>
      %cst_17 = arith.constant dense<0.000000e+00> : vector<1xf32>
      %38 = vector.multi_reduction <add>, %37, %cst_17 [1, 2] : vector<1x32x1xf32> to vector<1xf32>
      %39 = vector.shape_cast %38 : vector<1xf32> to vector<1x1x1xf32>
      %40 = vector.extract %39[0, 0, 0] : f32 from vector<1x1x1xf32>
      %41 = vector.broadcast %40 : f32 to vector<1x1x1xf32>
      %c0_18 = arith.constant 0 : index
      %c0_19 = arith.constant 0 : index
      %c0_20 = arith.constant 0 : index
      %42 = vector.load %arg4[%c0_18, %c0_19, %c0_20] : memref<1x1x1xf32, #tpu.memory_space<vmem>>, vector<1x1x1xf32>
      tpu.vector_store %arg4[%c0_18, %c0_19, %c0_20], %41 {strides = array<i32>} : memref<1x1x1xf32, #tpu.memory_space<vmem>>, vector<1x1x1xf32>,
    } else {
    }
    return
  }
  func.func @transform_0(%arg0: i32, %arg1: i32) -> (i32, i32) {
    %c1_i32 = arith.constant 1 : i32
    %0 = arith.muli %arg0, %c1_i32 : i32
    %1 = arith.addi %0, %arg1 : i32
    %c0_i32 = arith.constant 0 : i32
    %c0_i32_0 = arith.constant 0 : i32
    return %c0_i32, %1 : i32, i32
  }
  func.func @transform_1(%arg0: i32, %arg1: i32) -> (i32, i32) {
    %c0_i32 = arith.constant 0 : i32
    %c0_i32_0 = arith.constant 0 : i32
    %c0_i32_1 = arith.constant 0 : i32
    return %c0_i32, %c0_i32_0 : i32, i32
  }
  func.func @transform_2(%arg0: i32, %arg1: i32) -> (i32, i32, i32) {
    %c0_i32 = arith.constant 0 : i32
    %c0_i32_0 = arith.constant 0 : i32
    %c0_i32_1 = arith.constant 0 : i32
    return %arg0, %c0_i32, %c0_i32_0 : i32, i32, i32
  }
}

</mosaic_0001>

<bundles_post_ra>
// kernel: tpu_custom_call.1
= control target key start
LH: loop header
LB: loop body
LE: loop exit
PB: predicated region body
PF: predicated region fallthrough
CT: control target
= control target key end

     0   :  { %7 = vsyncpa [#allocation4], 0  ;;  %s423_s0 = inlined_call_operand.hbm [shape: f32[32,1024], index: 0, kind: input, shape index: {}]   ;;  %s424_s1 = inlined_call_operand.vmem [shape: f32[32,1], index: 1, kind: input, shape index: {}]   ;;  %s425_s2 = inlined_call_operand.hbm [shape: f32[1,1,1], index: 2, kind: output, shape index: {}]  }
   0x1   :  { %8 = vsyncpa [#allocation5], 0  ;;  %s349_s9 = smov [#allocation3]  }
   0x2   :  { %s18_s10 = sshll.u32 %s349_s9, 4  ;;  %s19_s10 = int_to_ptr.vmem [resolvable:$true] %s18_s10 }
   0x3   :  { %s313_s11 = scalar_lea.vmem %s19_s10, 4096  ;;  %p318_p1 = scmp.lt.s32.totalorder %s19_s10, %s19_s10 }
   0x4   :  { %p314_p0 = scmp.ne.s32.totalorder %s19_s10, %s313_s11  ;;  %p319_p2 = scmp.lt.s32.totalorder %s313_s11, %s313_s11 }
   0x6   :  { %p320_p3 = por %p319_p2, %p318_p1 }
   0x8   :  { %p321_p4 = pnand %p320_p3, %p314_p0 }
   0xa   :  { %324 = shalt.err (!%p321_p4)
}
   0xb   :  { %s350_s12 = smov 1024   ;;  %s351_s13 = smov 64  }
   0xc   :  { %24 = dma.hbm_to_vmem [thread:$0]  %s423_s0, 4096, %s19_s10, [#allocation4], %s350_s12, %s350_s12, %s351_s13  }
   0xd   :  { %345 = dma.done.wait [#allocation4], 4096  }
   0xe   :  { %346 = vsyncadd [#allocation4], 4294963200  ;;  %v375_v0 = vld [vmem:[%s424_s1] sm:$0xff]  ;;  %v380_v1 = vld [vmem:[%s424_s1 + $0x8] sm:$0xff]  ;;  %vm36_vm0 = vcmask 7168   ;;  %s353_s24 = smov [#allocation6]  }
   0xf   :  { %v385_v2 = vld [vmem:[%s424_s1 + $0x10] sm:$0xff]  ;;  %v390_v3 = vld [vmem:[%s424_s1 + $0x18] sm:$0xff]  ;;  %v256_v4 = vmul.f32 -1.442695, %v375_v0  ;;  %v257_v5 = vmul.f32 -1.442695, %v380_v1 }
  0x10   :  { %v49_v6 = vld [vmem:[#allocation3 + $0x40] sm:$0xff]  ;;  %v258_v7 = vmul.f32 -1.442695, %v385_v2  ;;  %v259_v8 = vmul.f32 -1.442695, %v390_v3  ;;  %v50_v9 = vld [vmem:[#allocation3 + $0x48] sm:$0xff] }
  0x11   :  { %v51_v10 = vld [vmem:[#allocation3 + $0x50] sm:$0xff]  ;;  %271 = vpow2.f32 %v256_v4  ;;  %v86_v11 = vadd.f32 %v50_v9, %v49_v6  ;;  %v52_v12 = vld [vmem:[#allocation3 + $0x58] sm:$0xff]  ;;  %v53_v14 = vld [vmem:[#allocation3 + $0x60] sm:$0xff]  ;;  %s247_s25 = sshll.u32 %s353_s24, 4  ;;  %vm239_vm1 = vcmask 0   ;;  %s248_s25 = int_to_ptr.vmem [resolvable:$true] %s247_s25 }
  0x12   :  { %273 = vpow2.f32 %v257_v5  ;;  %v57_v16 = vld [vmem:[#allocation3 + $0x80] sm:$0xff]  ;;  %v58_v17 = vld [vmem:[#allocation3 + $0x88] sm:$0xff]  ;;  %v59_v19 = vld [vmem:[#allocation3 + $0x90] sm:$0xff]  ;;  %s325_s27 = scalar_lea.vmem %s248_s25, 16  ;;  %s329_s28 = scalar_lea.vmem %s248_s25, 32 }
  0x13   :  { %275 = vpow2.f32 %v258_v7  ;;  %v87_v13 = vadd.f32 %v86_v11, %v51_v10  ;;  %v54_v18 = vld [vmem:[#allocation3 + $0x68] sm:$0xff]  ;;  %v95_v20 = vadd.f32 %v58_v17, %v57_v16  ;;  %v60_v22 = vld [vmem:[#allocation3 + $0x98] sm:$0xff]  ;;  %v55_v23 = vld [vmem:[#allocation3 + $0x70] sm:$0xff]  ;;  %p326_p5 = scmp.ne.s32.totalorder %s248_s25, %s325_s27  ;;  %p330_p6 = scmp.lt.s32.totalorder %s248_s25, %s248_s25 }
  0x14   :  { %277 = vpow2.f32 %v259_v8  ;;  %v61_v26 = vld [vmem:[#allocation3 + $0xa0] sm:$0xff]  ;;  %v56_v27 = vld [vmem:[#allocation3 + $0x78] sm:$0xff]  ;;  %v62_v30 = vld [vmem:[#allocation3 + $0xa8] sm:$0xff]  ;;  %p331_p7 = scmp.lt.s32.totalorder %s329_s28, %s325_s27 }
  0x15   :  { %v88_v15 = vadd.f32 %v87_v13, %v52_v12  ;;  %v96_v24 = vadd.f32 %v95_v20, %v59_v19  ;;  %v41_v31 = vld [vmem:[#allocation3] sm:$0xff]  ;;  %v42_v32 = vld [vmem:[#allocation3 + $0x8] sm:$0xff]  ;;  %v63_v35 = vld [vmem:[#allocation3 + $0xb0] sm:$0xff] }
  0x16   :  { %v77_v40 = vadd.f32 %v42_v32, %v41_v31  ;;  %v64_v41 = vld [vmem:[#allocation3 + $0xb8] sm:$0xff]  ;;  %v43_v44 = vld [vmem:[#allocation3 + $0x10] sm:$0xff]  ;;  %v65_v46 = vld [vmem:[#allocation3 + $0xc0] sm:$0xff]  ;;  %p332_p8 = por %p331_p7, %p330_p6 }
  0x17   :  { %v89_v21 = vadd.f32 %v88_v15, %v53_v14  ;;  %v97_v28 = vadd.f32 %v96_v24, %v60_v22  ;;  %v66_v47 = vld [vmem:[#allocation3 + $0xc8] sm:$0xff]  ;;  %v44_v54 = vld [vmem:[#allocation3 + $0x18] sm:$0xff]  ;;  %v67_v55 = vld [vmem:[#allocation3 + $0xd0] sm:$0xff] }
  0x18   :  { %v78_v52 = vadd.f32 %v77_v40, %v43_v44  ;;  %v104_v53 = vadd.f32 %v66_v47, %v65_v46  ;;  %v45_v58 = vld [vmem:[#allocation3 + $0x20] sm:$0xff]  ;;  %v68_v59 = vld [vmem:[#allocation3 + $0xd8] sm:$0xff]  ;;  %v46_v62 = vld [vmem:[#allocation3 + $0x28] sm:$0xff]  ;;  %p333_p9 = pnand %p332_p8, %p326_p5 }
  0x19   :  { %v90_v25 = vadd.f32 %v89_v21, %v54_v18  ;;  %v98_v33 = vadd.f32 %v97_v28, %v61_v26  ;;  %v69_v63 = vld [vmem:[#allocation3 + $0xe0] sm:$0xff]  ;;  %v47_v11 = vld [vmem:[#allocation3 + $0x30] sm:$0xff]  ;;  %v70_v12 = vld [vmem:[#allocation3 + $0xe8] sm:$0xff] }
  0x1a   :  { %v79_v56 = vadd.f32 %v78_v52, %v44_v54  ;;  %v105_v57 = vadd.f32 %v104_v53, %v67_v55  ;;  %v48_v20 = vld [vmem:[#allocation3 + $0x38] sm:$0xff]  ;;  %v71_v21 = vld [vmem:[#allocation3 + $0xf0] sm:$0xff] }
  0x1b   :  { %v91_v29 = vadd.f32 %v90_v25, %v55_v23  ;;  %v99_v37 = vadd.f32 %v98_v33, %v62_v30  ;;  %v72_v25 = vld [vmem:[#allocation3 + $0xf8] sm:$0xff] }
  0x1c   :  { %v80_v60 = vadd.f32 %v79_v56, %v45_v58  ;;  %v106_v61 = vadd.f32 %v105_v57, %v68_v59 }
  0x1d   :  { %v92_v34 = vadd.f32 %v91_v29, %v56_v27  ;;  %v100_v45 = vadd.f32 %v99_v37, %v63_v35  ;;  %v352_v27 = vmov 0.0  }
  0x1e   :  { %v272_v36 = vpop.eup %271  ;;  %v81_v7 = vadd.f32 %v80_v60, %v46_v62  ;;  %v107_v8 = vadd.f32 %v106_v61, %v69_v63  ;;  %38 = vst.msk [vmem:[#allocation2 + $0x8] sm:$0xff] %vm36_vm0, %v352_v27  ;;  %37 = vst.msk [vmem:[#allocation2] sm:$0xff] %vm36_vm0, %v352_v27 }
  0x1f   :  { %v274_v38 = vpop.eup %273  ;;  %v141_v39 = vadd.f32 1.0, %v272_v36  ;;  %93 = vadd.xlane.f32.xlu1 %v92_v34  ;;  %v101_v51 = vadd.f32 %v100_v45, %v64_v41  ;;  %39 = vst.msk [vmem:[#allocation2 + $0x10] sm:$0xff] %vm36_vm0, %v352_v27  ;;  %40 = vst.msk [vmem:[#allocation2 + $0x18] sm:$0xff] %vm36_vm0, %v352_v27 }
  0x20   :  { %v276_v42 = vpop.eup %275  ;;  %v142_v43 = vadd.f32 1.0, %v274_v38  ;;  %v82_v18 = vadd.f32 %v81_v7, %v47_v11  ;;  %v108_v19 = vadd.f32 %v107_v8, %v70_v12 }
  0x21   :  { %v278_v48 = vpop.eup %277  ;;  %v143_v49 = vadd.f32 1.0, %v276_v42  ;;  %279 = vrcp.f32 %v141_v39 }
  0x22   :  { %v144_v50 = vadd.f32 1.0, %v278_v48  ;;  %281 = vrcp.f32 %v142_v43  ;;  %v83_v23 = vadd.f32 %v82_v18, %v48_v20  ;;  %v109_v24 = vadd.f32 %v108_v19, %v71_v21 }
  0x23   :  { %283 = vrcp.f32 %v143_v49  ;;  %102 = vadd.xlane.f32.xlu1 %v101_v51  ;;  %v177_v48 = vand.u32 2147483647, %v375_v0  ;;  %v178_v49 = vand.u32 2147483647, %v380_v1  ;;  %v180_v51 = vand.u32 2147483647, %v390_v3 }
  0x24   :  { %285 = vrcp.f32 %v144_v50  ;;  %v110_v26 = vadd.f32 %v109_v24, %v72_v25  ;;  %v179_v50 = vand.u32 2147483647, %v385_v2 }
  0x25   :  { %v74_v28 = vld [vmem:[#allocation2 + $0x8] sm:$0xff]  ;;  %v73_v36 = vld [vmem:[#allocation2] sm:$0xff]  ;;  %v181_v52 = vsub.f32 0.0, %v177_v48  ;;  %v182_v54 = vsub.f32 0.0, %v178_v49  ;;  %v184_v57 = vsub.f32 0.0, %v180_v51 }
  0x26   :  { %v75_v31 = vld [vmem:[#allocation2 + $0x10] sm:$0xff]  ;;  %v76_v41 = vld [vmem:[#allocation2 + $0x18] sm:$0xff]  ;;  %v183_v56 = vsub.f32 0.0, %v179_v50 }
  0x27   :  { %v185_v58 = vmul.f32 1.442695, %v181_v52  ;;  %v187_v59 = vmul.f32 1.442695, %v182_v54  ;;  %v191_v61 = vmul.f32 1.442695, %v184_v57 }
  0x28   :  { %v189_v60 = vmul.f32 1.442695, %v183_v56 }
  0x2e   :  { %v280_v4 = vpop.eup %279 }
  0x2f   :  { %v282_v5 = vpop.eup %281  ;;  %v153_v6 = vsel %vm36_vm0, %v280_v4, 0.0 }
  0x30   :  { %v284_v9 = vpop.eup %283  ;;  %v154_v10 = vsel %vm36_vm0, %v282_v5, 0.0 }
  0x31   :  { %v286_v13 = vpop.eup %285  ;;  %v155_v14 = vadd.f32 %v154_v10, %v153_v6  ;;  %v156_v15 = vsel %vm36_vm0, %v284_v9, 0.0 }
  0x32   :  { %v158_v16 = vsel %vm36_vm0, %v286_v13, 0.0 }
  0x33   :  { %v157_v17 = vadd.f32 %v156_v15, %v155_v14  ;;  %v173_v14 = vmin.f32 %v375_v0, 0.0  ;;  %v174_v15 = vmin.f32 %v380_v1, 0.0 }
  0x35   :  { %v159_v22 = vadd.f32 %v158_v16, %v157_v17  ;;  %v175_v16 = vmin.f32 %v385_v2, 0.0  ;;  %v176_v17 = vmin.f32 %v390_v3, 0.0 }
  0x37   :  { %160 = vadd.xlane.f32.xlu0 %v159_v22 }
  0x3b   :  { %84 = vadd.xlane.f32.xlu0 %v83_v23 }
  0x3f   :  { %111 = vadd.xlane.f32.xlu0 %v110_v26 }
  0xa8   :  { %v94_v29 = vpop.xlane.xlu1 %93 }
  0xa9   :  { %v114_v30 = vadd.f32 %v94_v29, %v74_v28 }
  0xab   :  { %119 = vst.msk [vmem:[#allocation2 + $0x8] sm:$0xff] %vm36_vm0, %v114_v30 }
  0xac   :  { %v103_v32 = vpop.xlane.xlu1 %102 }
  0xad   :  { %v115_v33 = vadd.f32 %v103_v32, %v75_v31 }
  0xaf   :  { %120 = vst.msk [vmem:[#allocation2 + $0x10] sm:$0xff] %vm36_vm0, %v115_v33 }
  0xb2   :  { %v215_v31 = vld [vmem:[#allocation2 + $0x8] sm:$0xff] }
  0xb6   :  { %v216_v28 = vld [vmem:[#allocation2 + $0x10] sm:$0xff] }
  0xc0   :  { %v161_v34 = vpop.xlane.xlu0 %160 }
  0xc1   :  { %v162_v35 = vrot.slane %v161_v34, 4 }
  0xc3   :  { %v163_v37 = vadd.f32 %v162_v35, %v161_v34 }
  0xc4   :  { %v85_v38 = vpop.xlane.xlu0 %84 }
  0xc5   :  { %v164_v39 = vrot.slane %v163_v37, 2  ;;  %v113_v40 = vadd.f32 %v85_v38, %v73_v36 }
  0xc7   :  { %v165_v42 = vadd.f32 %v164_v39, %v163_v37  ;;  %118 = vst.msk [vmem:[#allocation2] sm:$0xff] %vm36_vm0, %v113_v40 }
  0xc8   :  { %v112_v43 = vpop.xlane.xlu0 %111 }
  0xc9   :  { %v166_v44 = vrot.slane %v165_v42, 1  ;;  %v116_v45 = vadd.f32 %v112_v43, %v76_v41 }
  0xcb   :  { %v167_v46 = vadd.f32 %v166_v44, %v165_v42  ;;  %121 = vst.msk [vmem:[#allocation2 + $0x18] sm:$0xff] %vm36_vm0, %v116_v45 }
  0xcd   :  { %260 = vpush %v167_v46 }
  0xce   :  { %v214_v27 = vld [vmem:[#allocation2] sm:$0xff] }
  0xd2   :  { %v217_v2 = vld [vmem:[#allocation2 + $0x18] sm:$0xff] }
  0xfe   :  { %s261_s0 = spop %260 }
  0xff   :  { %v169_v47 = vstv %s261_s0 }
 0x100   :  { %287 = vlog2.f32 %v169_v47 }
 0x101   :  { %289 = vpow2.f32 %v185_v58 }
 0x102   :  { %291 = vpow2.f32 %v187_v59 }
 0x103   :  { %293 = vpow2.f32 %v189_v60 }
 0x104   :  { %295 = vpow2.f32 %v191_v61 }
 0x10d   :  { %v288_v53 = vpop.eup %287 }
 0x10e   :  { %v171_v55 = vmul.f32 0.6931472, %v288_v53  ;;  %v290_v62 = vpop.eup %289 }
 0x10f   :  { %v292_v63 = vpop.eup %291  ;;  %v193_v6 = vadd.f32 1.0, %v290_v62 }
 0x110   :  { %262 = vpush %v171_v55  ;;  %v294_v4 = vpop.eup %293  ;;  %v194_v7 = vadd.f32 1.0, %v292_v63 }
 0x111   :  { %v296_v5 = vpop.eup %295  ;;  %v195_v8 = vadd.f32 1.0, %v294_v4  ;;  %297 = vlog2.f32 %v193_v6 }
 0x112   :  { %v196_v9 = vadd.f32 1.0, %v296_v5  ;;  %299 = vlog2.f32 %v194_v7 }
 0x113   :  { %301 = vlog2.f32 %v195_v8 }
 0x114   :  { %303 = vlog2.f32 %v196_v9 }
 0x11e   :  { %v298_v10 = vpop.eup %297 }
 0x11f   :  { %v300_v11 = vpop.eup %299  ;;  %v198_v18 = vmul.f32 0.6931472, %v298_v10 }
 0x120   :  { %v302_v12 = vpop.eup %301  ;;  %v200_v19 = vmul.f32 0.6931472, %v300_v11 }
 0x121   :  { %v304_v13 = vpop.eup %303  ;;  %v202_v20 = vmul.f32 0.6931472, %v302_v12  ;;  %v205_v22 = vsub.f32 %v173_v14, %v198_v18 }
 0x122   :  { %v204_v21 = vmul.f32 0.6931472, %v304_v13  ;;  %v206_v23 = vsub.f32 %v174_v15, %v200_v19 }
 0x123   :  { %v207_v24 = vsub.f32 %v175_v16, %v202_v20 }
 0x124   :  { %v208_v25 = vsub.f32 %v176_v17, %v204_v21 }
 0x141   :  { %s263_s1 = spop %262 }
 0x142   :  { %v209_v26 = vstv %s263_s1 }
 0x143   :  { %v210_v29 = vsub.f32 %v205_v22, %v209_v26  ;;  %v211_v0 = vsub.f32 %v206_v23, %v209_v26  ;;  %v212_v30 = vsub.f32 %v207_v24, %v209_v26  ;;  %v213_v1 = vsub.f32 %v208_v25, %v209_v26 }
 0x145   :  { %v218_v32 = vmul.f32 %v214_v27, %v210_v29  ;;  %v219_v3 = vmul.f32 %v215_v31, %v211_v0  ;;  %v220_v33 = vmul.f32 %v216_v28, %v212_v30  ;;  %v221_v34 = vmul.f32 %v217_v2, %v213_v1 }
 0x147   :  { %v222_v35 = vsel %vm36_vm0, %v218_v32, 0.0  ;;  %v223_v36 = vsel %vm36_vm0, %v219_v3, 0.0  ;;  %v225_v38 = vsel %vm36_vm0, %v220_v33, 0.0  ;;  %v227_v40 = vsel %vm36_vm0, %v221_v34, 0.0 }
 0x148   :  { %v224_v37 = vadd.f32 %v223_v36, %v222_v35 }
 0x14a   :  { %v226_v39 = vadd.f32 %v225_v38, %v224_v37 }
 0x14c   :  { %v228_v41 = vadd.f32 %v227_v40, %v226_v39 }
 0x14e   :  { %229 = vadd.xlane.f32.xlu1 %v228_v41 }
 0x1d7   :  { %v230_v42 = vpop.xlane.xlu1 %229 }
 0x1d8   :  { %v231_v43 = vrot.slane %v230_v42, 4 }
 0x1da   :  { %v232_v44 = vadd.f32 %v231_v43, %v230_v42 }
 0x1dc   :  { %v233_v45 = vrot.slane %v232_v44, 2 }
 0x1de   :  { %v234_v46 = vadd.f32 %v233_v45, %v232_v44 }
 0x1e0   :  { %v235_v47 = vrot.slane %v234_v46, 1 }
 0x1e2   :  { %v236_v48 = vadd.f32 %v235_v47, %v234_v46 }
 0x1e4   :  { %264 = vpush %v236_v48 }
 0x215   :  { %s265_s26 = spop %264 }
 0x216   :  { %v238_v49 = vstv %s265_s26 }
 0x217   :  { %240 = vst.msk [vmem:[#allocation6] sm:$0x1] %vm239_vm1, %v238_v49 }
 0x218   :  { %336 = shalt.err (!%p333_p9)
}
 0x219   :  { %250 = dma.vmem_to_hbm [thread:$0]  %s248_s25, 16, %s425_s2, [#allocation5]  }
 0x21a   :  { %347 = dma.done.wait [#allocation5], 16  }
 0x21b   :  { %348 = vsyncadd [#allocation5], 4294967280 }
 0x21c   :  { %254 = vsyncpa [#allocation4], 1 }
 0x21d   :  { %255 = vsyncpa [#allocation5], 1 }

</bundles_post_ra>
